<compile_context>
chip_gen: v5e
topology: v5e:2x2
jax: 0.10.0
libtpu: 0.0.40
codegen_flags: <defaults>
</compile_context>

<pallas_src>
import jax
import jax.numpy as jnp
from jax.experimental import pallas as pl
from jax.experimental.pallas import tpu as pltpu


def mlp_kernel(xt_ref, w1t_ref, b1t_ref, w2t_ref, b2t_ref, emt_ref, outt_ref):
    # All arrays are in [features, batch_tile] layout (batch on the lane axis).
    xt = xt_ref[...]                                                   # (12, TB)

    # linear1: em^T = W1 @ x^T + b1   -> (H, TB)
    em = jnp.dot(w1t_ref[...], xt,
                 preferred_element_type=jnp.float32) + b1t_ref[...]
    emt_ref[...] = em.astype(emt_ref.dtype)                            # lane-dense store

    # linear2: logits^T = W2 @ em^T + b2  -> (12, TB)
    logits = jnp.dot(w2t_ref[...], em,
                     preferred_element_type=jnp.float32) + b2t_ref[...]

    # softmax over the feature dim (= sublane axis here), numerically stable.
    m = jnp.max(logits, axis=0, keepdims=True)                         # (1, TB)
    e = jnp.exp(logits - m)
    s = jnp.sum(e, axis=0, keepdims=True)
    inv = pl.reciprocal(s, approx=True)                                # EUP, not VPU divide
    outt_ref[...] = (e * inv).astype(outt_ref.dtype)                   # lane-dense store


def _round_up(n, m):
    return ((n + m - 1) // m) * m


def mlp_forward(x, w1, b1, w2, b2, *, tile_b=256):
    """x: (B, 12); w1: (12, H); b1: (H,); w2: (H, 12); b2: (12,).

    Returns (out_em (B, H) float32, softmax output (B, 12) float32).
    """
    B, F_in = x.shape
    H = w1.shape[1]
    F_out = w2.shape[1]

    # Batch tile: lane-dense (multiple of 128); shrink for tiny batches.
    TB = tile_b if B >= tile_b else _round_up(max(B, 1), 128)
    Bp = _round_up(B, TB)
    num_tiles = Bp // TB

    # Layout plumbing: batch on the lane axis, padded to a tile multiple.
    xt = jnp.zeros((F_in, Bp), x.dtype).at[:, :B].set(x.T)             # (12, Bp)
    w1t = w1.T                                                         # (H, 12)
    b1t = b1.reshape(H, 1)                                             # (H, 1)
    w2t = w2.T                                                         # (12, H)
    b2t = b2.reshape(F_out, 1)                                         # (12, 1)

    emt, outt = pl.pallas_call(
        mlp_kernel,
        out_shape=(
            jax.ShapeDtypeStruct((H, Bp), jnp.float32),      # em^T
            jax.ShapeDtypeStruct((F_out, Bp), jnp.float32),  # softmax^T
        ),
        grid=(num_tiles,),
        in_specs=[
            pl.BlockSpec((F_in, TB), lambda i: (0, i)),      # x^T tile
            pl.BlockSpec((H, F_in), lambda i: (0, 0)),       # W1^T  (VMEM-resident)
            pl.BlockSpec((H, 1), lambda i: (0, 0)),          # b1    (VMEM-resident)
            pl.BlockSpec((F_out, H), lambda i: (0, 0)),      # W2^T  (VMEM-resident)
            pl.BlockSpec((F_out, 1), lambda i: (0, 0)),      # b2    (VMEM-resident)
        ],
        out_specs=(
            pl.BlockSpec((H, TB), lambda i: (0, i)),
            pl.BlockSpec((F_out, TB), lambda i: (0, i)),
        ),
        compiler_params=pltpu.CompilerParams(
            dimension_semantics=("parallel",),               # megacore on v7x
        ),
    )(xt, w1t, b1t, w2t, b2t)

    # Drop the padded batch columns, return in the module's (B, feat) layout.
    return emt[:, :B].T, outt[:, :B].T


def init_params(key, hidden_dim):
    """Deterministic init mirroring nn.Linear's U(-1/sqrt(fan_in), 1/sqrt(fan_in))."""
    k1, k2, k3, k4 = jax.random.split(key, 4)
    bound1 = 1.0 / jnp.sqrt(12.0)
    bound2 = 1.0 / jnp.sqrt(float(hidden_dim))
    # weights stored already transposed to [in, out]
    w1 = jax.random.uniform(k1, (12, hidden_dim), jnp.float32, -bound1, bound1)
    b1 = jax.random.uniform(k2, (hidden_dim,), jnp.float32, -bound1, bound1)
    w2 = jax.random.uniform(k3, (hidden_dim, 12), jnp.float32, -bound2, bound2)
    b2 = jax.random.uniform(k4, (12,), jnp.float32, -bound2, bound2)
    return w1, b1, w2, b2


def reference_forward(x, w1, b1, w2, b2):
    em = x @ w1 + b1[None, :]
    logits = em @ w2 + b2[None, :]
    out = jax.nn.softmax(logits, axis=1)
    return em, out


def _check(batch, hidden_dim, key):
    k_x, k_p = jax.random.split(key)
    x = jax.random.normal(k_x, (batch, 12), jnp.float32)
    w1, b1, w2, b2 = init_params(k_p, hidden_dim)

    out_em, output = mlp_forward(x, w1, b1, w2, b2)
    jax.block_until_ready((out_em, output))

    ref_em, ref_out = reference_forward(x, w1, b1, w2, b2)
    assert out_em.shape == (batch, hidden_dim) and output.shape == (batch, 12)
    assert jnp.allclose(out_em, ref_em, atol=1e-5, rtol=1e-5)
    # approx reciprocal (EUP) has ~1e-4 relative error; softmax values <= 1.
    assert jnp.allclose(output, ref_out, atol=2e-3, rtol=2e-3)


if __name__ == "__main__":
    key = jax.random.PRNGKey(0)
    k1, k2 = jax.random.split(key)

    # small single-tile case (B=8 -> padded to one 128-lane tile)
    _check(batch=8, hidden_dim=32, key=k1)
    # multi-tile case with a ragged tail (B=300 -> 2 tiles of 256, tail padded)
    _check(batch=300, hidden_dim=32, key=k2)

    print("KERNEL_OK")
</pallas_src>

<mosaic_0001>
module attributes {stable_mosaic.version = 11 : i64} {
  func.func @mlp_kernel(%arg0: i32, %arg1: memref<12x128xf32, #tpu.memory_space<vmem>>, %arg2: memref<32x12xf32, #tpu.memory_space<vmem>>, %arg3: memref<32x1xf32, #tpu.memory_space<vmem>>, %arg4: memref<12x32xf32, #tpu.memory_space<vmem>>, %arg5: memref<12x1xf32, #tpu.memory_space<vmem>>, %arg6: memref<32x128xf32, #tpu.memory_space<vmem>>, %arg7: memref<12x128xf32, #tpu.memory_space<vmem>>) attributes {dimension_semantics = [#tpu.dimension_semantics<parallel>], iteration_bounds = array<i64: 1>, scalar_prefetch = 0 : i64, scratch_operands = 0 : i64, tpu.core_type = #tpu.core_type<tc>, window_params = [{transform_indices = @transform_0, window_bounds = array<i64: 12, 128>}, {pipeline_mode = #tpu.pipeline_mode<synchronous>, transform_indices = @transform_1, window_bounds = array<i64: 32, 12>}, {pipeline_mode = #tpu.pipeline_mode<synchronous>, transform_indices = @transform_2, window_bounds = array<i64: 32, 1>}, {pipeline_mode = #tpu.pipeline_mode<synchronous>, transform_indices = @transform_3, window_bounds = array<i64: 12, 32>}, {pipeline_mode = #tpu.pipeline_mode<synchronous>, transform_indices = @transform_4, window_bounds = array<i64: 12, 1>}, {transform_indices = @transform_5, window_bounds = array<i64: 32, 128>}, {transform_indices = @transform_6, window_bounds = array<i64: 12, 128>}]} {
    %c0 = arith.constant 0 : index
    %c0_0 = arith.constant 0 : index
    %0 = vector.load %arg1[%c0, %c0_0] : memref<12x128xf32, #tpu.memory_space<vmem>>, vector<12x128xf32>
    %c0_1 = arith.constant 0 : index
    %c0_2 = arith.constant 0 : index
    %1 = vector.load %arg2[%c0_1, %c0_2] : memref<32x12xf32, #tpu.memory_space<vmem>>, vector<32x12xf32>
    %cst = arith.constant dense<0.000000e+00> : vector<32x128xf32>
    %2 = tpu.matmul %1, %0, %cst {dimension_numbers = #tpu.dot_dimension_numbers<[1], [0], [0], [1], [0, 0, 1, 1], [], []>} : vector<32x12xf32>, vector<12x128xf32>, vector<32x128xf32> -> vector<32x128xf32>
    %c0_3 = arith.constant 0 : index
    %c0_4 = arith.constant 0 : index
    %3 = vector.load %arg3[%c0_3, %c0_4] : memref<32x1xf32, #tpu.memory_space<vmem>>, vector<32x1xf32>
    %4 = vector.broadcast %3 : vector<32x1xf32> to vector<32x128xf32>
    %5 = arith.addf %2, %4 : vector<32x128xf32>
    %c0_5 = arith.constant 0 : index
    %c0_6 = arith.constant 0 : index
    %6 = vector.load %arg6[%c0_5, %c0_6] : memref<32x128xf32, #tpu.memory_space<vmem>>, vector<32x128xf32>
    tpu.vector_store %arg6[%c0_5, %c0_6], %5 {strides = array<i32>} : memref<32x128xf32, #tpu.memory_space<vmem>>, vector<32x128xf32>,
    %c0_7 = arith.constant 0 : index
    %c0_8 = arith.constant 0 : index
    %7 = vector.load %arg4[%c0_7, %c0_8] : memref<12x32xf32, #tpu.memory_space<vmem>>, vector<12x32xf32>
    %cst_9 = arith.constant dense<0.000000e+00> : vector<12x128xf32>
    %8 = tpu.matmul %7, %5, %cst_9 {dimension_numbers = #tpu.dot_dimension_numbers<[1], [0], [0], [1], [0, 0, 1, 1], [], []>} : vector<12x32xf32>, vector<32x128xf32>, vector<12x128xf32> -> vector<12x128xf32>
    %c0_10 = arith.constant 0 : index
    %c0_11 = arith.constant 0 : index
    %9 = vector.load %arg5[%c0_10, %c0_11] : memref<12x1xf32, #tpu.memory_space<vmem>>, vector<12x1xf32>
    %10 = vector.broadcast %9 : vector<12x1xf32> to vector<12x128xf32>
    %11 = arith.addf %8, %10 : vector<12x128xf32>
    %cst_12 = arith.constant dense<0xFF800000> : vector<128xf32>
    %12 = vector.multi_reduction <maximumf>, %11, %cst_12 [0] : vector<12x128xf32> to vector<128xf32>
    %13 = vector.shape_cast %12 : vector<128xf32> to vector<1x128xf32>
    %14 = vector.broadcast %13 : vector<1x128xf32> to vector<12x128xf32>
    %15 = arith.subf %11, %14 : vector<12x128xf32>
    %16 = math.exp %15 : vector<12x128xf32>
    %cst_13 = arith.constant dense<0.000000e+00> : vector<128xf32>
    %17 = vector.multi_reduction <add>, %16, %cst_13 [0] : vector<12x128xf32> to vector<128xf32>
    %18 = vector.shape_cast %17 : vector<128xf32> to vector<1x128xf32>
    %19 = tpu.reciprocal %18 {approx = true} : vector<1x128xf32> -> vector<1x128xf32>
    %20 = vector.broadcast %19 : vector<1x128xf32> to vector<12x128xf32>
    %21 = arith.mulf %16, %20 : vector<12x128xf32>
    %c0_14 = arith.constant 0 : index
    %c0_15 = arith.constant 0 : index
    %22 = vector.load %arg7[%c0_14, %c0_15] : memref<12x128xf32, #tpu.memory_space<vmem>>, vector<12x128xf32>
    tpu.vector_store %arg7[%c0_14, %c0_15], %21 {strides = array<i32>} : memref<12x128xf32, #tpu.memory_space<vmem>>, vector<12x128xf32>,
    return
  }
  func.func @transform_0(%arg0: i32) -> (i32, i32) {
    %c0_i32 = arith.constant 0 : i32
    %c0_i32_0 = arith.constant 0 : i32
    return %c0_i32, %arg0 : i32, i32
  }
  func.func @transform_1(%arg0: i32) -> (i32, i32) {
    %c0_i32 = arith.constant 0 : i32
    %c0_i32_0 = arith.constant 0 : i32
    %c0_i32_1 = arith.constant 0 : i32
    return %c0_i32, %c0_i32_0 : i32, i32
  }
  func.func @transform_2(%arg0: i32) -> (i32, i32) {
    %c0_i32 = arith.constant 0 : i32
    %c0_i32_0 = arith.constant 0 : i32
    %c0_i32_1 = arith.constant 0 : i32
    return %c0_i32, %c0_i32_0 : i32, i32
  }
  func.func @transform_3(%arg0: i32) -> (i32, i32) {
    %c0_i32 = arith.constant 0 : i32
    %c0_i32_0 = arith.constant 0 : i32
    %c0_i32_1 = arith.constant 0 : i32
    return %c0_i32, %c0_i32_0 : i32, i32
  }
  func.func @transform_4(%arg0: i32) -> (i32, i32) {
    %c0_i32 = arith.constant 0 : i32
    %c0_i32_0 = arith.constant 0 : i32
    %c0_i32_1 = arith.constant 0 : i32
    return %c0_i32, %c0_i32_0 : i32, i32
  }
  func.func @transform_5(%arg0: i32) -> (i32, i32) {
    %c0_i32 = arith.constant 0 : i32
    %c0_i32_0 = arith.constant 0 : i32
    return %c0_i32, %arg0 : i32, i32
  }
  func.func @transform_6(%arg0: i32) -> (i32, i32) {
    %c0_i32 = arith.constant 0 : i32
    %c0_i32_0 = arith.constant 0 : i32
    return %c0_i32, %arg0 : i32, i32
  }
}

</mosaic_0001>

<bundles_post_ra>
// kernel: tpu_custom_call.1
= control target key start
LH: loop header
LB: loop body
LE: loop exit
PB: predicated region body
PF: predicated region fallthrough
CT: control target
= control target key end

     0   :  { %12 = vsyncpa [#allocation3], 0  ;;  %vm67_vm0 = vcmask 1043456   ;;  %vm54_vm1 = vcmask 97280   ;;  %v290_v4 = vmov 0   ;;  %s392_s0 = inlined_call_operand.vmem [shape: f32[12,128], index: 0, kind: input, shape index: {}]   ;;  %s393_s1 = inlined_call_operand.vmem [shape: f32[32,12], index: 1, kind: input, shape index: {}]   ;;  %s394_s2 = inlined_call_operand.vmem [shape: f32[32,1], index: 2, kind: input, shape index: {}]   ;;  %s395_s3 = inlined_call_operand.vmem [shape: f32[12,32], index: 3, kind: input, shape index: {}]   ;;  %s396_s4 = inlined_call_operand.vmem [shape: f32[12,1], index: 4, kind: input, shape index: {}]   ;;  %s397_s5 = inlined_call_operand.hbm [shape: f32[32,128], index: 5, kind: output, shape index: {0}]   ;;  %s398_s6 = inlined_call_operand.hbm [shape: f32[12,128], index: 6, kind: output, shape index: {1}]  }
   0x1   :  { %v25_v0 = vld [vmem:[%s392_s0 + $0x8] sm:$0xf]  ;;  %v24_v1 = vld [vmem:[%s392_s0] sm:$0xff]  ;;  %v28_v2 = vld [vmem:[%s393_s1 + $0x10] sm:$0xff]  ;;  %229 = vset.pattern.permute.xlu0 %v290_v4  ;;  %230 = vset.pattern.permute.xlu1 %v290_v4 }
   0x2   :  { %218 = vmatpush.msk.msra.mxu2 %vm67_vm0, %v25_v0  ;;  %211 = vmatpush.msk.msra.mxu0 %vm67_vm0, %v25_v0  ;;  %v26_v3 = vld [vmem:[%s393_s1] sm:$0xff]  ;;  %v33_v5 = vld [vmem:[%s394_s2 + $0x18] sm:$0xff]  ;;  %v31_v6 = vld [vmem:[%s394_s2 + $0x8] sm:$0xff] }
   0x4   :  { %219 = vmatpush.msra.mxu2 %v24_v1  ;;  %86 = vmatpush.msra.mxu0 %v24_v1 }
   0x5   :  { %13 = vsyncpa [#allocation5], 0  ;;  %214 = vmatmul.msk.f32.vlgmr.msra.gmra.mxu2 %vm54_vm1, %v28_v2  ;;  %212 = vmatmul.msk.f32.vlgmr.msra.gmra.mxu0 %vm54_vm1, %v26_v3  ;;  %v29_v7 = vld [vmem:[%s393_s1 + $0x18] sm:$0xff]  ;;  %v27_v8 = vld [vmem:[%s393_s1 + $0x8] sm:$0xff]  ;;  %vm118_vm2 = vcmask 261120   ;;  %s291_s21 = smov [#allocation2]  }
   0x6   :  { %51 = vperm.xlu0 %229, %v33_v5   ;;  %41 = vperm.xlu1 %230, %v31_v6   ;;  %v32_v9 = vld [vmem:[%s394_s2 + $0x10] sm:$0xff]  ;;  %v30_v10 = vld [vmem:[%s394_s2] sm:$0xff]  ;;  %v107_v12 = vld [vmem:[%s396_s4 + $0x8] sm:$0xf]  ;;  %s179_s22 = sshll.u32 %s291_s21, 4  ;;  %s181_s25 = sshll.u32 %s397_s5, 4  ;;  %s180_s22 = int_to_ptr.vmem [resolvable:$true] %s179_s22  ;;  %s182_s25 = int_to_ptr.hbm [resolvable:$true] %s181_s25 }
   0x7   :  { %231 = vset.pattern.permute.xlu2 %v290_v4  ;;  %v106_v15 = vld [vmem:[%s396_s4] sm:$0xff]  ;;  %v105_v26 = vld [vmem:[%s395_s3 + $0x8] sm:$0xf]  ;;  %s292_s26 = smov 128   ;;  %s293_s27 = smov 8  }
   0x8   :  { %115 = vperm.xlu2 %231, %v107_v12   ;;  %v104_v25 = vld [vmem:[%s395_s3] sm:$0xff]  ;;  %s294_s3 = smov [#allocation4]   ;;  %s194_s30 = sshll.u32 %s398_s6, 4  ;;  %s195_s30 = int_to_ptr.hbm [resolvable:$true] %s194_s30 }
   0x9   :  { %s192_s5 = sshll.u32 %s294_s3, 4  ;;  %s193_s5 = int_to_ptr.vmem [resolvable:$true] %s192_s5 }
   0xd   :  { %215 = vmatmul.msk.f32.gmra.mxu2 %vm54_vm1, %v29_v7  ;;  %213 = vmatmul.msk.f32.gmra.mxu0 %vm54_vm1, %v27_v8 }
   0xe   :  { %46 = vperm.xlu0 %229, %v32_v9   ;;  %36 = vperm.xlu1 %230, %v30_v10  }
  0x10   :  { %110 = vperm.xlu2 %231, %v106_v15  }
  0x62   :  { %v116_v27 = vpop.permute.xlu2 %115 }
  0x6a   :  { %v111_v28 = vpop.permute.xlu2 %110 }
  0x78   :  { %v42_v11 = vpop.permute.xlu1 %41  ;;  %v52_v13 = vpop.permute.xlu0 %51 }
  0x80   :  { %v37_v14 = vpop.permute.xlu1 %36  ;;  %v47_v18 = vpop.permute.xlu0 %46 }
  0x82   :  { %v88_v16 = vpop.f32.mrf.mxu0 }
  0x83   :  { %v89_v17 = vadd.f32 %v88_v16, %v37_v14 }
  0x85   :  { %100 = vst [vmem:[#allocation2] sm:$0xff] %v89_v17 }
  0x88   :  { %v94_v19 = vpop.f32.mrf.mxu2 }
  0x89   :  { %v95_v20 = vadd.f32 %v94_v19, %v47_v18 }
  0x8a   :  { %v91_v21 = vpop.f32.mrf.mxu0 }
  0x8b   :  { %102 = vst [vmem:[#allocation2 + $0x10] sm:$0xff] %v95_v20  ;;  %v92_v22 = vadd.f32 %v91_v21, %v42_v11 }
  0x8d   :  { %101 = vst [vmem:[#allocation2 + $0x8] sm:$0xff] %v92_v22 }
  0x90   :  { %v97_v23 = vpop.f32.mrf.mxu2 }
  0x91   :  { %v98_v24 = vadd.f32 %v97_v23, %v52_v13 }
  0x93   :  { %103 = vst [vmem:[#allocation2 + $0x18] sm:$0xff] %v98_v24  ;;  %137 = vmatpush.msra.mxu1 %v98_v24  ;;  %220 = vmatpush.msra.mxu3 %v98_v24 }
  0x94   :  { %187 = dma.vmem_to_hbm [thread:$0]  %s180_s22, 512, %s182_s25, [#allocation3], %s292_s26, %s292_s26, %s293_s27  }
  0x95   :  { %138 = vmatpush.msra.mxu1 %v95_v20  ;;  %221 = vmatpush.msra.mxu3 %v95_v20 }
  0x97   :  { %139 = vmatpush.msra.mxu1 %v92_v22  ;;  %222 = vmatpush.msra.mxu3 %v92_v22 }
  0x99   :  { %140 = vmatpush.msra.mxu1 %v89_v17  ;;  %223 = vmatpush.msra.mxu3 %v89_v17 }
  0x9a   :  { %216 = vmatmul.msk.f32.vlgmr.msra.gmra.mxu1 %vm118_vm2, %v104_v25  ;;  %217 = vmatmul.msk.f32.vlgmr.msra.gmra.mxu3 %vm118_vm2, %v105_v26 }
 0x117   :  { %v142_v29 = vpop.f32.mrf.mxu1 }
 0x118   :  { %v143_v32 = vadd.f32 %v142_v29, %v111_v28 }
 0x11d   :  { %v145_v30 = vpop.f32.mrf.mxu3 }
 0x11e   :  { %v146_v31 = vadd.f32 %v145_v30, %v116_v27 }
 0x120   :  { %v148_v33 = vsel %vm67_vm0, %v146_v31, -inf }
 0x121   :  { %v149_v34 = vmax.f32 %v143_v32, %v148_v33 }
 0x123   :  { %v150_v35 = vrot.slane %v149_v34, 4 }
 0x125   :  { %v151_v36 = vmax.f32 %v149_v34, %v150_v35 }
 0x127   :  { %v152_v37 = vrot.slane %v151_v36, 2 }
 0x129   :  { %v153_v38 = vmax.f32 %v151_v36, %v152_v37 }
 0x12b   :  { %v154_v39 = vrot.slane %v153_v38, 1 }
 0x12d   :  { %v155_v40 = vmax.f32 %v153_v38, %v154_v39 }
 0x12f   :  { %v156_v41 = vsub.f32 %v143_v32, %v155_v40  ;;  %v157_v42 = vsub.f32 %v146_v31, %v155_v40 }
 0x131   :  { %v158_v43 = vmul.f32 1.442695, %v156_v41  ;;  %v160_v44 = vmul.f32 1.442695, %v157_v42 }
 0x133   :  { %232 = vpow2.f32 %v158_v43 }
 0x134   :  { %234 = vpow2.f32 %v160_v44 }
 0x139   :  { %v233_v45 = vpop.eup %232 }
 0x13a   :  { %v235_v46 = vpop.eup %234 }
 0x13b   :  { %v162_v47 = vsel %vm67_vm0, %v235_v46, 0.0 }
 0x13c   :  { %v163_v48 = vadd.f32 %v233_v45, %v162_v47 }
 0x13e   :  { %v164_v49 = vrot.slane %v163_v48, 4 }
 0x140   :  { %v165_v50 = vadd.f32 %v164_v49, %v163_v48 }
 0x142   :  { %v166_v51 = vrot.slane %v165_v50, 2 }
 0x144   :  { %v167_v52 = vadd.f32 %v166_v51, %v165_v50 }
 0x146   :  { %v168_v53 = vrot.slane %v167_v52, 1 }
 0x148   :  { %v169_v54 = vadd.f32 %v168_v53, %v167_v52 }
 0x14a   :  { %236 = vrcp.f32 %v169_v54 }
 0x150   :  { %v237_v55 = vpop.eup %236 }
 0x151   :  { %v172_v56 = vmul.f32 %v237_v55, %v235_v46  ;;  %v171_v57 = vmul.f32 %v237_v55, %v233_v45 }
 0x153   :  { %174 = vst [vmem:[#allocation4 + $0x8] sm:$0xf] %v172_v56 }
 0x154   :  { %173 = vst [vmem:[#allocation4] sm:$0xff] %v171_v57 }
 0x155   :  { %200 = dma.vmem_to_hbm [thread:$0]  %s193_s5, 256, %s195_s30, [#allocation5], %s292_s26, %s292_s26, %s293_s27  }
 0x156   :  { %286 = dma.done.wait [#allocation3], 512  }
 0x157   :  { %287 = vsyncadd [#allocation3], 4294966784 }
 0x158   :  { %288 = dma.done.wait [#allocation5], 256  }
 0x159   :  { %289 = vsyncadd [#allocation5], 4294967040 }
 0x15a   :  { %209 = vsyncpa [#allocation3], 1 }
 0x15b   :  { %210 = vsyncpa [#allocation5], 1 }

</bundles_post_ra>
